<compile_context>
chip_gen: v7x
topology: tpu7x:2x2x1
jax: 0.10.0
libtpu: 0.0.40
codegen_flags: <defaults>
</compile_context>

<pallas_src>
import jax
import jax.numpy as jnp
from jax.experimental import pallas as pl
from jax.experimental.pallas import tpu as pltpu

EPS = 1e-5  # nn.LayerNorm default


def _round_up(x, m):
    return (x + m - 1) // m * m


def _pick_tile(total, preferred, align):
    """Pick a tile size for one axis.

    Returns (tile, padded_total). Prefers (a) the full extent (always legal,
    no grid on this axis) or (b) an `align`-multiple divisor of `total`
    (no wrapper-side padding). Falls back to padding only if neither exists.
    """
    if total <= preferred:
        return total, total
    t = (preferred // align) * align
    while t >= align:
        if total % t == 0:
            return t, total
        t -= align
    tile = max((preferred // align) * align, align)
    return tile, _round_up(total, tile)


def prenorm_kernel(x_ref, gamma_ref, beta_ref, w_ref, b_ref, o_ref, y_ref):
    # Grid = (row tiles [outer, "parallel"], H tiles [inner, "arbitrary"]).
    # x_ref: (TILE_M, D), gamma/beta: (1, D) f32, w_ref: (D, TILE_H) bf16,
    # b_ref: (1, TILE_H) f32, o_ref: (TILE_M, TILE_H),
    # y_ref: (TILE_M, D) bf16 VMEM scratch (cached normalized activations).

    # --- LayerNorm (f32 stats) only on the first H tile of each row tile ----
    @pl.when(pl.program_id(1) == 0)
    def _():
        x = x_ref[...].astype(jnp.float32)
        mean = jnp.mean(x, axis=-1, keepdims=True)            # (TILE_M, 1)
        centered = x - mean
        var = jnp.mean(centered * centered, axis=-1, keepdims=True)
        inv_std = jax.lax.rsqrt(var + EPS)
        y = centered * inv_std * gamma_ref[...] + beta_ref[...]
        y_ref[...] = y.astype(jnp.bfloat16)

    # --- fn: Linear(D -> TILE_H) on the MXU, bf16 inputs / f32 accumulation --
    out = jnp.dot(y_ref[...], w_ref[...], preferred_element_type=jnp.float32)
    o_ref[...] = (out + b_ref[...]).astype(o_ref.dtype)


def prenorm(x, gamma, beta, w, b, *, tile_m=None, tile_h=None, out_dtype=None):
    B, S, D = x.shape
    H = w.shape[1]
    M = B * S
    out_dtype = x.dtype if out_dtype is None else out_dtype

    # Tile selection: prefer divisors (no pad); 256-row / 512-lane defaults.
    if tile_m is None:
        tile_m, Mp = _pick_tile(M, 256, 8)
    else:
        Mp = M if M % tile_m == 0 else _round_up(M, tile_m)
    if tile_h is None:
        tile_h, Hp = _pick_tile(H, 512, 128)
    else:
        Hp = H if H % tile_h == 0 else _round_up(H, tile_h)

    x2 = x.reshape(M, D)
    if Mp != M:  # only in the irregular fallback case
        x2 = jnp.pad(x2, ((0, Mp - M), (0, 0)))

    w_bf = w.astype(jnp.bfloat16)
    b_p = b.astype(jnp.float32)
    if Hp != H:  # only in the irregular fallback case
        w_bf = jnp.pad(w_bf, ((0, 0), (0, Hp - H)))
        b_p = jnp.pad(b_p, (0, Hp - H))

    gamma2 = gamma.reshape(1, D).astype(jnp.float32)
    beta2 = beta.reshape(1, D).astype(jnp.float32)
    b2 = b_p.reshape(1, Hp)

    n_m = Mp // tile_m
    n_h = Hp // tile_h

    # --- VMEM budget: blocks (double-buffered) + scratch + in-kernel temps ---
    x_itemsize = jnp.dtype(x2.dtype).itemsize
    out_itemsize = jnp.dtype(out_dtype).itemsize
    block_bytes = (
        2 * tile_m * D * x_itemsize            # x blocks
        + 2 * D * tile_h * 2                   # weight blocks (bf16)
        + 2 * tile_m * tile_h * out_itemsize   # output blocks
        + 2 * 2 * D * 4                        # gamma + beta
        + 2 * tile_h * 4                       # bias
    )
    scratch_bytes = tile_m * D * 2             # cached bf16 normalized tile
    temp_bytes = 5 * tile_m * D * 4 + tile_m * tile_h * 4  # f32 LN temps + acc
    try:
        vmem_cap = int(pltpu.get_tpu_info().vmem_capacity_bytes)
    except Exception:
        vmem_cap = 64 << 20
    # Leave headroom: ~48 MiB cap on 64-MiB parts (v7x), ~96 MiB on 128-MiB.
    cap = (96 << 20) if vmem_cap >= (128 << 20) else (48 << 20)
    vmem_limit = int(
        min(max(block_bytes + scratch_bytes + temp_bytes + (4 << 20), 16 << 20), cap)
    )

    out = pl.pallas_call(
        prenorm_kernel,
        out_shape=jax.ShapeDtypeStruct((Mp, Hp), out_dtype),
        grid_spec=pltpu.PrefetchScalarGridSpec(
            num_scalar_prefetch=0,
            # Row tiles OUTER (megacore-sharded), H tiles INNER (sequential so
            # the j==0 LayerNorm pass always precedes the cached-y reuses).
            grid=(n_m, n_h),
            in_specs=[
                pl.BlockSpec((tile_m, D), lambda i, j: (i, 0)),   # x rows
                pl.BlockSpec((1, D), lambda i, j: (0, 0)),        # gamma
                pl.BlockSpec((1, D), lambda i, j: (0, 0)),        # beta
                pl.BlockSpec((D, tile_h), lambda i, j: (0, j)),   # weight (bf16)
                pl.BlockSpec((1, tile_h), lambda i, j: (0, j)),   # bias
            ],
            out_specs=pl.BlockSpec((tile_m, tile_h), lambda i, j: (i, j)),
            scratch_shapes=[pltpu.VMEM((tile_m, D), jnp.bfloat16)],
        ),
        compiler_params=pltpu.CompilerParams(
            dimension_semantics=("parallel", "arbitrary"),
            vmem_limit_bytes=vmem_limit,
        ),
    )(x2, gamma2, beta2, w_bf, b2)

    if Mp != M or Hp != H:
        out = out[:M, :H]
    return out.reshape(B, S, H)


def prenorm_reference(x, gamma, beta, w, b):
    # Pure-f32 reference of LayerNorm(dim) followed by Linear(D, H).
    xf = x.astype(jnp.float32)
    mean = jnp.mean(xf, axis=-1, keepdims=True)
    var = jnp.mean((xf - mean) ** 2, axis=-1, keepdims=True)
    xn = (xf - mean) * jax.lax.rsqrt(var + EPS)
    y = xn * gamma + beta
    return (y @ w + b).astype(x.dtype)


if __name__ == "__main__":
    B, S, D, H = 2, 8, 32, 32

    key = jax.random.PRNGKey(0)
    kx, kg, kb, kw, kbb = jax.random.split(key, 5)

    x = jax.random.normal(kx, (B, S, D), dtype=jnp.float32)
    # LayerNorm params (PyTorch init: weight=1, bias=0; perturbed to make the
    # test non-trivial while staying deterministic).
    gamma = jnp.ones((D,), jnp.float32) + 0.1 * jax.random.normal(kg, (D,))
    beta = 0.1 * jax.random.normal(kb, (D,))
    # fn = Linear(D, H)
    w = jax.random.normal(kw, (D, H), dtype=jnp.float32) * (1.0 / jnp.sqrt(D))
    b = 0.1 * jax.random.normal(kbb, (H,))

    out = prenorm(x, gamma, beta, w, b)
    out = jax.block_until_ready(out)

    ref = prenorm_reference(x, gamma, beta, w, b)
    assert out.shape == (B, S, H)
    # Tolerance accounts for the bf16 MXU path (f32 accumulation) vs the pure
    # f32 reference -- standard/expected TPU matmul precision.
    assert jnp.allclose(out, ref, atol=1e-1, rtol=2e-2), (
        float(jnp.max(jnp.abs(out - ref)))
    )

    print("KERNEL_OK")
</pallas_src>

<mosaic_0001>
module attributes {stable_mosaic.version = 11 : i64} {
  func.func @prenorm_kernel(%arg0: i32, %arg1: i32, %arg2: memref<16x32xf32, #tpu.memory_space<vmem>>, %arg3: memref<1x32xf32, #tpu.memory_space<vmem>>, %arg4: memref<1x32xf32, #tpu.memory_space<vmem>>, %arg5: memref<32x32xbf16, #tpu.memory_space<vmem>>, %arg6: memref<1x32xf32, #tpu.memory_space<vmem>>, %arg7: memref<16x32xf32, #tpu.memory_space<vmem>>, %arg8: memref<16x32xbf16, #tpu.memory_space<vmem>>) attributes {dimension_semantics = [#tpu.dimension_semantics<parallel>, #tpu.dimension_semantics<arbitrary>], iteration_bounds = array<i64: 1, 1>, scalar_prefetch = 0 : i64, scratch_operands = 1 : i64, tpu.core_type = #tpu.core_type<tc>, window_params = [{transform_indices = @transform_0, window_bounds = array<i64: 16, 32>}, {pipeline_mode = #tpu.pipeline_mode<synchronous>, transform_indices = @transform_1, window_bounds = array<i64: 1, 32>}, {pipeline_mode = #tpu.pipeline_mode<synchronous>, transform_indices = @transform_2, window_bounds = array<i64: 1, 32>}, {transform_indices = @transform_3, window_bounds = array<i64: 32, 32>}, {transform_indices = @transform_4, window_bounds = array<i64: 1, 32>}, {transform_indices = @transform_5, window_bounds = array<i64: 16, 32>}]} {
    %c0_i32 = arith.constant 0 : i32
    %0 = arith.cmpi eq, %arg1, %c0_i32 : i32
    %1 = arith.extui %0 : i1 to i32
    %c0_i32_0 = arith.constant 0 : i32
    %2 = arith.cmpi ne, %1, %c0_i32_0 : i32
    scf.if %2 {
      %c0_8 = arith.constant 0 : index
      %c0_9 = arith.constant 0 : index
      %10 = vector.load %arg2[%c0_8, %c0_9] : memref<16x32xf32, #tpu.memory_space<vmem>>, vector<16x32xf32>
      %cst_10 = arith.constant dense<0.000000e+00> : vector<16xf32>
      %11 = vector.multi_reduction <add>, %10, %cst_10 [1] : vector<16x32xf32> to vector<16xf32>
      %12 = vector.shape_cast %11 : vector<16xf32> to vector<16x1xf32>
      %cst_11 = arith.constant 3.200000e+01 : f32
      %13 = vector.broadcast %cst_11 : f32 to vector<16x1xf32>
      %14 = arith.divf %12, %13 : vector<16x1xf32>
      %15 = vector.broadcast %14 : vector<16x1xf32> to vector<16x32xf32>
      %16 = arith.subf %10, %15 : vector<16x32xf32>
      %17 = arith.mulf %16, %16 : vector<16x32xf32>
      %cst_12 = arith.constant dense<0.000000e+00> : vector<16xf32>
      %18 = vector.multi_reduction <add>, %17, %cst_12 [1] : vector<16x32xf32> to vector<16xf32>
      %19 = vector.shape_cast %18 : vector<16xf32> to vector<16x1xf32>
      %cst_13 = arith.constant 3.200000e+01 : f32
      %20 = vector.broadcast %cst_13 : f32 to vector<16x1xf32>
      %21 = arith.divf %19, %20 : vector<16x1xf32>
      %cst_14 = arith.constant 9.99999974E-6 : f32
      %22 = vector.broadcast %cst_14 : f32 to vector<16x1xf32>
      %23 = arith.addf %21, %22 : vector<16x1xf32>
      %24 = math.rsqrt %23 : vector<16x1xf32>
      %25 = vector.broadcast %24 : vector<16x1xf32> to vector<16x32xf32>
      %26 = arith.mulf %16, %25 : vector<16x32xf32>
      %c0_15 = arith.constant 0 : index
      %c0_16 = arith.constant 0 : index
      %27 = vector.load %arg3[%c0_15, %c0_16] : memref<1x32xf32, #tpu.memory_space<vmem>>, vector<1x32xf32>
      %28 = vector.broadcast %27 : vector<1x32xf32> to vector<16x32xf32>
      %29 = arith.mulf %26, %28 : vector<16x32xf32>
      %c0_17 = arith.constant 0 : index
      %c0_18 = arith.constant 0 : index
      %30 = vector.load %arg4[%c0_17, %c0_18] : memref<1x32xf32, #tpu.memory_space<vmem>>, vector<1x32xf32>
      %31 = vector.broadcast %30 : vector<1x32xf32> to vector<16x32xf32>
      %32 = arith.addf %29, %31 : vector<16x32xf32>
      %33 = arith.truncf %32 : vector<16x32xf32> to vector<16x32xbf16>
      %c0_19 = arith.constant 0 : index
      %c0_20 = arith.constant 0 : index
      %34 = vector.load %arg8[%c0_19, %c0_20] : memref<16x32xbf16, #tpu.memory_space<vmem>>, vector<16x32xbf16>
      tpu.vector_store %arg8[%c0_19, %c0_20], %33 {strides = array<i32>} : memref<16x32xbf16, #tpu.memory_space<vmem>>, vector<16x32xbf16>,
    } else {
    }
    %c0 = arith.constant 0 : index
    %c0_1 = arith.constant 0 : index
    %3 = vector.load %arg8[%c0, %c0_1] : memref<16x32xbf16, #tpu.memory_space<vmem>>, vector<16x32xbf16>
    %c0_2 = arith.constant 0 : index
    %c0_3 = arith.constant 0 : index
    %4 = vector.load %arg5[%c0_2, %c0_3] : memref<32x32xbf16, #tpu.memory_space<vmem>>, vector<32x32xbf16>
    %cst = arith.constant dense<0.000000e+00> : vector<16x32xf32>
    %5 = tpu.matmul %3, %4, %cst {dimension_numbers = #tpu.dot_dimension_numbers<[1], [0], [0], [1], [0, 0, 1, 1], [], []>} : vector<16x32xbf16>, vector<32x32xbf16>, vector<16x32xf32> -> vector<16x32xf32>
    %c0_4 = arith.constant 0 : index
    %c0_5 = arith.constant 0 : index
    %6 = vector.load %arg6[%c0_4, %c0_5] : memref<1x32xf32, #tpu.memory_space<vmem>>, vector<1x32xf32>
    %7 = vector.broadcast %6 : vector<1x32xf32> to vector<16x32xf32>
    %8 = arith.addf %5, %7 : vector<16x32xf32>
    %c0_6 = arith.constant 0 : index
    %c0_7 = arith.constant 0 : index
    %9 = vector.load %arg7[%c0_6, %c0_7] : memref<16x32xf32, #tpu.memory_space<vmem>>, vector<16x32xf32>
    tpu.vector_store %arg7[%c0_6, %c0_7], %8 {strides = array<i32>} : memref<16x32xf32, #tpu.memory_space<vmem>>, vector<16x32xf32>,
    return
  }
  func.func @transform_0(%arg0: i32, %arg1: i32) -> (i32, i32) {
    %c0_i32 = arith.constant 0 : i32
    %c0_i32_0 = arith.constant 0 : i32
    return %arg0, %c0_i32 : i32, i32
  }
  func.func @transform_1(%arg0: i32, %arg1: i32) -> (i32, i32) {
    %c0_i32 = arith.constant 0 : i32
    %c0_i32_0 = arith.constant 0 : i32
    %c0_i32_1 = arith.constant 0 : i32
    return %c0_i32, %c0_i32_0 : i32, i32
  }
  func.func @transform_2(%arg0: i32, %arg1: i32) -> (i32, i32) {
    %c0_i32 = arith.constant 0 : i32
    %c0_i32_0 = arith.constant 0 : i32
    %c0_i32_1 = arith.constant 0 : i32
    return %c0_i32, %c0_i32_0 : i32, i32
  }
  func.func @transform_3(%arg0: i32, %arg1: i32) -> (i32, i32) {
    %c0_i32 = arith.constant 0 : i32
    %c0_i32_0 = arith.constant 0 : i32
    return %c0_i32, %arg1 : i32, i32
  }
  func.func @transform_4(%arg0: i32, %arg1: i32) -> (i32, i32) {
    %c0_i32 = arith.constant 0 : i32
    %c0_i32_0 = arith.constant 0 : i32
    return %c0_i32, %arg1 : i32, i32
  }
  func.func @transform_5(%arg0: i32, %arg1: i32) -> (i32, i32) {
    %c0_i32 = arith.constant 0 : i32
    return %arg0, %arg1 : i32, i32
  }
}

</mosaic_0001>

<bundles_post_ra>
// kernel: tpu_custom_call.1
= control target key start
LH: loop header
LB: loop body
LE: loop exit
PB: predicated region body
PF: predicated region fallthrough
CT: control target
= control target key end

     0   :  { %10 = vsyncpa [#allocation4], 0  ;;  %s395_s0 = inlined_call_operand.hbm [shape: f32[16,32], index: 0, kind: input, shape index: {}]   ;;  %s396_s1 = inlined_call_operand.vmem [shape: f32[1,32], index: 1, kind: input, shape index: {}]   ;;  %s397_s2 = inlined_call_operand.vmem [shape: f32[1,32], index: 2, kind: input, shape index: {}]   ;;  %s398_s3 = inlined_call_operand.hbm [shape: bf16[32,32], index: 3, kind: input, shape index: {}]   ;;  %s399_s4 = inlined_call_operand.vmem [shape: f32[1,32], index: 4, kind: input, shape index: {}]   ;;  %s400_s5 = inlined_call_operand.hbm [shape: f32[16,32], index: 5, kind: output, shape index: {}]  }
   0x1   :  { %11 = vsyncpa [#allocation7], 0 }
   0x2   :  { %12 = vsyncpa [#allocation5], 0  ;;  %s297_s18 = smov [#allocation3]   ;;  %s225_s22 = scalar_lea.hbm %s395_s0, 256 }
   0x3   :  { %s18_s19 = sshll.u32 %s297_s18, 4  ;;  %p226_p0 = scmp.ne.s32.totalorder %s395_s0, %s225_s22  ;;  %s19_s19 = int_to_ptr.vmem [resolvable:$true] %s18_s19 }
   0x4   :  { %p229_p1 = scmp.lt.u32.totalorder %s225_s22, %s395_s0 }
   0x6   :  { %p231_p2 = pnand %p229_p1, %p226_p0 }
   0x8   :  { %234 = shalt.err (!%p231_p2)
}
   0x9   :  { %s235_s27 = scalar_lea.vmem %s19_s19, 256  ;;  %p240_p4 = scmp.lt.s32.totalorder %s19_s19, %s19_s19 }
   0xa   :  { %p236_p3 = scmp.ne.s32.totalorder %s19_s19, %s235_s27  ;;  %p241_p5 = scmp.lt.s32.totalorder %s235_s27, %s235_s27 }
   0xc   :  { %p242_p6 = por %p241_p5, %p240_p4 }
   0xe   :  { %p243_p7 = pnand %p242_p6, %p236_p3 }
  0x10   :  { %246 = shalt.err (!%p243_p7)
}
  0x11   :  { %s298_s28 = smov 128   ;;  %s299_s29 = smov 8  }
  0x12   :  { %24 = dma.hbm_to_vmem [thread:$0]  %s395_s0, 256, %s19_s19, [#allocation4], %s298_s28, %s298_s28, %s299_s29  }
  0x13   :  { %s300_s7 = smov [#allocation6]   ;;  %s247_s11 = scalar_lea.hbm %s398_s3, 256 }
  0x14   :  { %s34_s8 = sshll.u32 %s300_s7, 4  ;;  %p248_p8 = scmp.ne.s32.totalorder %s398_s3, %s247_s11  ;;  %s35_s8 = int_to_ptr.vmem [resolvable:$true] %s34_s8 }
  0x15   :  { %p251_p9 = scmp.lt.u32.totalorder %s247_s11, %s398_s3 }
  0x17   :  { %p253_p10 = pnand %p251_p9, %p248_p8 }
  0x19   :  { %256 = shalt.err (!%p253_p10)
}
  0x1a   :  { %s257_s16 = scalar_lea.vmem %s35_s8, 256  ;;  %p262_p12 = scmp.lt.s32.totalorder %s35_s8, %s35_s8 }
  0x1b   :  { %p258_p11 = scmp.ne.s32.totalorder %s35_s8, %s257_s16  ;;  %p263_p13 = scmp.lt.s32.totalorder %s257_s16, %s257_s16 }
  0x1d   :  { %p264_p0 = por %p263_p13, %p262_p12 }
  0x1f   :  { %p265_p1 = pnand %p264_p0, %p258_p11 }
  0x21   :  { %268 = shalt.err (!%p265_p1)
}
  0x22   :  { %s301_s0 = smov 64   ;;  %s302_s17 = smov 4  }
  0x23   :  { %40 = dma.hbm_to_vmem [thread:$0]  %s398_s3, 256, %s35_s8, [#allocation7], %s301_s0, %s301_s0, %s302_s17  }
  0x24   :  { %291 = dma.done.wait [#allocation4], 256  }
  0x25   :  { %292 = vsyncadd [#allocation4], 4294967040 }
  0x26   :  { %293 = dma.done.wait [#allocation7], 256  }
  0x27   :  { %294 = vsyncadd [#allocation7], 4294967040  ;;  %vm56_vm0 = vcmask 261120   ;;  %v54_v0 = vld [vmem:[#allocation3] sm:$0xff]  ;;  %v55_v1 = vld [vmem:[#allocation3 + $0x8] sm:$0xff]  ;;  %v303_v15 = vmov 0.0  }
  0x28   :  { %v57_v2 = vsel %vm56_vm0, %v54_v0, 0.0  ;;  %v60_v3 = vsel %vm56_vm0, %v55_v1, 0.0  ;;  %v219_v14 = vld [vmem:[#allocation6] sm:$0xff]   ;;  %202 = vmatprep.subr.bf16.mxu0 %v303_v15  ;;  %v220_v16 = vld [vmem:[#allocation6 + $0x8] sm:$0xff]   ;;  %vm304_vm1 = vmmov 0  }
  0x29   :  { %58 = vadd.xlane.f32.xlu0 %v57_v2  ;;  %203 = vmatpush3.bf16.msra.mxu0 %v219_v14  ;;  %v193_v25 = vld [vmem:[%s396_s1] ss:$0 sm:$0xff]  ;;  %s305_s1 = smov [#allocation8]  }
  0x2a   :  { %206 = vmatprep.mubr.msk.bf16.mxu0 %vm304_vm1, %v303_v15  ;;  %204 = vmatprep.subr.bf16.mxu0 %v303_v15  ;;  %v194_v29 = vld [vmem:[%s397_s2] ss:$0 sm:$0xff]  ;;  %s180_s25 = sshll.u32 %s305_s1, 4  ;;  %s181_s25 = int_to_ptr.vmem [resolvable:$true] %s180_s25 }
  0x2b   :  { %v195_v35 = vld [vmem:[%s399_s4] ss:$0 sm:$0xff]  ;;  %s269_s2 = scalar_lea.vmem %s181_s25, 256  ;;  %p274_p3 = scmp.lt.s32.totalorder %s181_s25, %s181_s25 }
  0x2c   :  { %p270_p2 = scmp.ne.s32.totalorder %s181_s25, %s269_s2  ;;  %p275_p4 = scmp.lt.s32.totalorder %s269_s2, %s269_s2 }
  0x2d   :  { %61 = vadd.xlane.f32.xlu0 %v60_v3  ;;  %205 = vmatpush3.bf16.msra.mxu0 %v220_v16 }
  0x2e   :  { %p276_p5 = por %p275_p4, %p274_p3 }
  0x30   :  { %p277_p6 = pnand %p276_p5, %p270_p2 }
  0xb6   :  { %v59_v4 = vpop.xlane.xlu0 %58 }
  0xb7   :  { %v64_v5 = vmul.f32 0.03125, %v59_v4 }
  0xb9   :  { %v66_v6 = vsub.f32 %v54_v0, %v64_v5 }
  0xba   :  { %v62_v7 = vpop.xlane.xlu0 %61 }
  0xbb   :  { %v65_v8 = vmul.f32 0.03125, %v62_v7  ;;  %v68_v9 = vmul.f32 %v66_v6, %v66_v6 }
  0xbd   :  { %v67_v10 = vsub.f32 %v55_v1, %v65_v8  ;;  %v70_v11 = vsel %vm56_vm0, %v68_v9, 0.0 }
  0xbe   :  { %71 = vadd.xlane.f32.xlu1 %v70_v11 }
  0xbf   :  { %v69_v12 = vmul.f32 %v67_v10, %v67_v10 }
  0xc1   :  { %v73_v13 = vsel %vm56_vm0, %v69_v12, 0.0 }
  0xc2   :  { %74 = vadd.xlane.f32.xlu1 %v73_v13 }
 0x14b   :  { %v72_v17 = vpop.xlane.xlu1 %71 }
 0x14c   :  { %v76_v18 = vmul.f32 0.03125, %v72_v17 }
 0x14e   :  { %v78_v19 = vadd.f32 1e-05, %v76_v18 }
 0x14f   :  { %v75_v20 = vpop.xlane.xlu1 %74 }
 0x150   :  { %221 = vrsqrt.f32 %v78_v19  ;;  %v77_v21 = vmul.f32 0.03125, %v75_v20 }
 0x152   :  { %v79_v22 = vadd.f32 1e-05, %v77_v21 }
 0x154   :  { %223 = vrsqrt.f32 %v79_v22 }
 0x15a   :  { %v222_v23 = vpop.eup %221 }
 0x15b   :  { %v82_v24 = vmul.f32 %v222_v23, %v66_v6 }
 0x15d   :  { %v91_v27 = vmul.f32 %v193_v25, %v82_v24 }
 0x15e   :  { %v224_v26 = vpop.eup %223 }
 0x15f   :  { %v83_v28 = vmul.f32 %v224_v26, %v67_v10  ;;  %v100_v31 = vadd.f32 %v194_v29, %v91_v27 }
 0x161   :  { %v92_v30 = vmul.f32 %v193_v25, %v83_v28 }
 0x163   :  { %v101_v32 = vadd.f32 %v194_v29, %v92_v30 }
 0x165   :  { %v102_v33 = vpack.c.bf16 %v101_v32, %v100_v31 }
 0x167   :  { %103 = vst.msk [vmem:[#allocation2] sm:$0xff] %vm56_vm0, %v102_v33 }
 0x16e   :  { %v104_v34 = vld [vmem:[#allocation2] sm:$0xff] }
 0x16f   :  { %207 = vmatmul.mubr.msk.bf16.vlgmr.msra.gmra.mrb[0].mxu0 %vm56_vm0, %v104_v34 }
 0x242   :  { %v166_v36 = vpop.f32.mrb[0].mxu0 }
 0x243   :  { %v167_v37 = vadd.f32 %v195_v35, %v166_v36  ;;  %v208_v38 = vpop.f32.mrb[1].mxu0 }
 0x244   :  { %v169_v39 = vpop.f32.mrb[2].mxu0 }
 0x245   :  { %173 = vst.msk [vmem:[#allocation8] sm:$0xff] %vm56_vm0, %v167_v37  ;;  %v170_v40 = vadd.f32 %v195_v35, %v169_v39  ;;  %v209_v41 = vpop.f32.mrb[3].mxu0 }
 0x247   :  { %174 = vst.msk [vmem:[#allocation8 + $0x8] sm:$0xff] %vm56_vm0, %v170_v40 }
 0x248   :  { %280 = shalt.err (!%p277_p6)
}
 0x249   :  { %s281_s27 = scalar_lea.hbm %s400_s5, 256 }
 0x24a   :  { %p282_p7 = scmp.ne.s32.totalorder %s400_s5, %s281_s27  ;;  %p285_p8 = scmp.lt.u32.totalorder %s281_s27, %s400_s5 }
 0x24c   :  { %p287_p9 = pnand %p285_p8, %p282_p7 }
 0x24e   :  { %290 = shalt.err (!%p287_p9)
}
 0x24f   :  { %186 = dma.vmem_to_hbm [thread:$0]  %s181_s25, 256, %s400_s5, [#allocation5], %s298_s28, %s298_s28, %s299_s29  }
 0x250   :  { %295 = dma.done.wait [#allocation5], 256  }
 0x251   :  { %296 = vsyncadd [#allocation5], 4294967040 }
 0x252   :  { %190 = vsyncpa [#allocation4], 1 }
 0x253   :  { %191 = vsyncpa [#allocation7], 1 }
 0x254   :  { %192 = vsyncpa [#allocation5], 1 }

</bundles_post_ra>
